<compile_context>
chip_gen: v5e
topology: v5e:2x2
jax: 0.10.0
libtpu: 0.0.40
codegen_flags: <defaults>
</compile_context>

<pallas_src>
import functools

import jax
import jax.numpy as jnp
import numpy as np
from jax.experimental import pallas as pl
from jax.experimental.pallas import tpu as pltpu

N_ROWS_DEFAULT = 50
_LANE = 128
_MAX_SAMPLES_PER_BLOCK = 256   # 2*Bt*L f32 tiles stay small on every chip


def _round_up(x: int, m: int) -> int:
    return (x + m - 1) // m * m


def _make_detr_kernel(inv_w: float, inv_h: float):
    """Kernel factory; 1/w and 1/h are baked in as Python-scalar constants."""

    def kernel(lo_ref, hi_ref, nv2_ref, lbl_ref, nv1_ref,
               ctr_ref, wh_ref, cls_ref):
        # lo_ref  : VMEM (2*Bt, L) f32 -- rows alternate [x1, y1] per sample
        # hi_ref  : VMEM (2*Bt, L) f32 -- rows alternate [x2, y2] per sample
        # nv2_ref : VMEM (2*Bt, 1) i32 -- valid-box count, repeated per row
        # lbl_ref : VMEM (Bt, L)   i32 -- labels (one row per sample)
        # nv1_ref : VMEM (Bt, 1)   i32 -- valid-box count per sample
        # ctr_ref : VMEM (2*Bt, L) f32 -- rows alternate [cx, cy]
        # wh_ref  : VMEM (2*Bt, L) f32 -- rows alternate [w, h]
        # cls_ref : VMEM (Bt, L)   i32
        lo = lo_ref[...]
        hi = hi_ref[...]

        rows = jax.lax.broadcasted_iota(jnp.int32, lo.shape, 0)
        lanes = jax.lax.broadcasted_iota(jnp.int32, lo.shape, 1)

        # Even rows are x coordinates (scale by 1/w), odd rows are y (1/h).
        # Scalar constants only -> no captured array constants.
        scale = jnp.where((rows & 1) == 0, inv_w, inv_h)

        valid = lanes < nv2_ref[...]            # (2*Bt,1) broadcast over lanes
        ctr_ref[...] = jnp.where(valid, (lo + hi) * (0.5 * scale), 0.0)
        wh_ref[...] = jnp.where(valid, (hi - lo) * scale, 0.0)

        lanes_c = jax.lax.broadcasted_iota(jnp.int32, lbl_ref.shape, 1)
        cls_ref[...] = jnp.where(lanes_c < nv1_ref[...], lbl_ref[...], 0)

    return kernel


@functools.partial(jax.jit, static_argnames=("n_rows",))
def detr_encode_batch(images, bboxes, labels, num_boxes,
                      n_rows: int = N_ROWS_DEFAULT):
    """Batched DETR target encoding.

    images   : (B, C, H, W)  -- passed through unchanged
    bboxes   : (B, M, 4)     -- xyxy pixel coords; rows >= num_boxes[b] ignored
    labels   : (B, M)        -- int class ids
    num_boxes: (B,)          -- valid boxes per sample
    returns  : images, reg_targets (B, n_rows, 4) f32,
               cls_targets (B, n_rows) i32, pos_targets (B,) i32
    """
    B = images.shape[0]
    h, w = images.shape[-2], images.shape[-1]
    M = bboxes.shape[1]
    if M > n_rows:
        raise ValueError(f"Got {M} boxes per sample but n_rows={n_rows}.")

    L = _round_up(max(n_rows, 1), _LANE)            # lane-dense (multiple of 128)
    Bt = min(_MAX_SAMPLES_PER_BLOCK, _round_up(B, 8))  # samples per grid step
    Bp = _round_up(B, Bt)                           # padded batch
    nblk = Bp // Bt

    bb = bboxes.astype(jnp.float32)

    def to_rows(x):  # (B, M, 2) -> (Bp*2, L): 2 coordinate rows per sample
        x = jnp.transpose(x, (0, 2, 1))                         # (B, 2, M)
        x = jnp.pad(x, ((0, Bp - B), (0, 0), (0, L - M)))       # (Bp, 2, L)
        return x.reshape(Bp * 2, L)

    lo_t = to_rows(bb[..., 0:2])                                # [x1, y1] rows
    hi_t = to_rows(bb[..., 2:4])                                # [x2, y2] rows
    lbl_t = jnp.pad(labels.astype(jnp.int32),
                    ((0, Bp - B), (0, L - M)))                  # (Bp, L)

    nv = jnp.minimum(num_boxes.astype(jnp.int32), jnp.int32(n_rows))  # (B,)
    nv_p = jnp.pad(nv, (0, Bp - B))                             # padded samples -> 0
    nv1 = nv_p.reshape(Bp, 1)
    nv2 = jnp.repeat(nv_p, 2).reshape(Bp * 2, 1)

    kernel = _make_detr_kernel(1.0 / float(w), 1.0 / float(h))

    bytes_accessed = 4 * (2 * Bp * L * 4) + 2 * (Bp * L * 4)    # f32 + i32 tiles
    ctr_out, wh_out, cls_out = pl.pallas_call(
        kernel,
        out_shape=(
            jax.ShapeDtypeStruct((Bp * 2, L), jnp.float32),
            jax.ShapeDtypeStruct((Bp * 2, L), jnp.float32),
            jax.ShapeDtypeStruct((Bp, L), jnp.int32),
        ),
        grid=(nblk,),
        in_specs=[
            pl.BlockSpec((2 * Bt, L), lambda i: (i, 0)),
            pl.BlockSpec((2 * Bt, L), lambda i: (i, 0)),
            pl.BlockSpec((2 * Bt, 1), lambda i: (i, 0)),
            pl.BlockSpec((Bt, L), lambda i: (i, 0)),
            pl.BlockSpec((Bt, 1), lambda i: (i, 0)),
        ],
        out_specs=(
            pl.BlockSpec((2 * Bt, L), lambda i: (i, 0)),
            pl.BlockSpec((2 * Bt, L), lambda i: (i, 0)),
            pl.BlockSpec((Bt, L), lambda i: (i, 0)),
        ),
        compiler_params=pltpu.CompilerParams(
            dimension_semantics=(("parallel",) if nblk > 1 else ("arbitrary",))),
        cost_estimate=pl.CostEstimate(
            flops=8 * 2 * Bp * L, transcendentals=0,
            bytes_accessed=bytes_accessed),
    )(lo_t, hi_t, nv2, lbl_t, nv1)

    # Back to the PyTorch row-major convention (fused slice/concat/transpose).
    ctr = ctr_out.reshape(Bp, 2, L)[:B, :, :n_rows]             # (B, 2, n_rows)
    wh = wh_out.reshape(Bp, 2, L)[:B, :, :n_rows]               # (B, 2, n_rows)
    reg_targets = jnp.transpose(jnp.concatenate([ctr, wh], axis=1), (0, 2, 1))
    # TODO(synk): torch.long is int64; using int32 (JAX x64 disabled by default).
    cls_targets = cls_out[:B, :n_rows]                          # (B, n_rows)
    pos_targets = nv
    return images, reg_targets, cls_targets, pos_targets


def detr_encode(image, bboxes, labels, n_rows: int = N_ROWS_DEFAULT):
    """Single-sample API matching DETREncoder.forward((image, bboxes, labels))."""
    n = bboxes.shape[0]
    _, reg, cls, pos = detr_encode_batch(
        image[None], bboxes[None], labels[None],
        jnp.array([n], jnp.int32), n_rows=n_rows)
    return image, reg[0], cls[0], pos[0]


if __name__ == "__main__":
    key = jax.random.PRNGKey(0)
    k_img, k_xy, k_wh, k_lbl = jax.random.split(key, 4)

    B, C, H, W = 2, 3, 16, 16
    max_boxes = 7
    n_rows = N_ROWS_DEFAULT
    counts = jnp.array([5, 3], jnp.int32)   # valid boxes per sample

    images = jax.random.normal(k_img, (B, C, H, W), jnp.float32)

    # Valid xyxy boxes in pixel coordinates (x2 > x1, y2 > y1).
    tl = jax.random.uniform(k_xy, (B, max_boxes, 2), jnp.float32,
                            minval=0.0, maxval=8.0)
    sz = jax.random.uniform(k_wh, (B, max_boxes, 2), jnp.float32,
                            minval=1.0, maxval=7.0)
    bboxes = jnp.concatenate([tl, tl + sz], axis=-1)            # (B, max_boxes, 4)
    labels = jax.random.randint(k_lbl, (B, max_boxes), 0, 10, jnp.int32)

    out_img, reg_targets, cls_targets, pos_targets = detr_encode_batch(
        images, bboxes, labels, counts, n_rows=n_rows)
    jax.block_until_ready((out_img, reg_targets, cls_targets, pos_targets))

    # Pure-numpy reference.
    bb_np = np.asarray(bboxes, np.float32)
    lbl_np = np.asarray(labels, np.int32)
    ref_reg = np.zeros((B, n_rows, 4), np.float32)
    ref_cls = np.zeros((B, n_rows), np.int32)
    for b in range(B):
        n = int(counts[b])
        x1 = bb_np[b, :n, 0] / W
        y1 = bb_np[b, :n, 1] / H
        x2 = bb_np[b, :n, 2] / W
        y2 = bb_np[b, :n, 3] / H
        ref_reg[b, :n] = np.stack(
            [(x1 + x2) * 0.5, (y1 + y2) * 0.5, x2 - x1, y2 - y1], axis=-1)
        ref_cls[b, :n] = lbl_np[b, :n]

    assert out_img.shape == (B, C, H, W)
    assert reg_targets.shape == (B, n_rows, 4)
    assert cls_targets.shape == (B, n_rows)
    np.testing.assert_allclose(np.asarray(reg_targets), ref_reg,
                               atol=1e-6, rtol=1e-5)
    assert np.array_equal(np.asarray(cls_targets), ref_cls)
    assert np.array_equal(np.asarray(pos_targets), np.asarray(counts))

    # Single-sample path (exact DETREncoder.forward semantics).
    n0 = int(counts[0])
    img1, reg1, cls1, pos1 = detr_encode(
        images[0], bboxes[0, :n0], labels[0, :n0], n_rows=n_rows)
    jax.block_until_ready((img1, reg1, cls1, pos1))
    np.testing.assert_allclose(np.asarray(reg1), ref_reg[0],
                               atol=1e-6, rtol=1e-5)
    assert np.array_equal(np.asarray(cls1), ref_cls[0])
    assert int(pos1) == n0

    print("KERNEL_OK")
</pallas_src>

<mosaic_0001>
module attributes {stable_mosaic.version = 11 : i64} {
  func.func @kernel(%arg0: i32, %arg1: memref<16x128xf32, #tpu.memory_space<vmem>>, %arg2: memref<16x128xf32, #tpu.memory_space<vmem>>, %arg3: memref<16x1xi32, #tpu.memory_space<vmem>>, %arg4: memref<8x128xi32, #tpu.memory_space<vmem>>, %arg5: memref<8x1xi32, #tpu.memory_space<vmem>>, %arg6: memref<16x128xf32, #tpu.memory_space<vmem>>, %arg7: memref<16x128xf32, #tpu.memory_space<vmem>>, %arg8: memref<8x128xi32, #tpu.memory_space<vmem>>) attributes {dimension_semantics = [#tpu.dimension_semantics<arbitrary>], iteration_bounds = array<i64: 1>, scalar_prefetch = 0 : i64, scratch_operands = 0 : i64, tpu.core_type = #tpu.core_type<tc>, window_params = [{transform_indices = @transform_0, window_bounds = array<i64: 16, 128>}, {transform_indices = @transform_1, window_bounds = array<i64: 16, 128>}, {transform_indices = @transform_2, window_bounds = array<i64: 16, 1>}, {transform_indices = @transform_3, window_bounds = array<i64: 8, 128>}, {transform_indices = @transform_4, window_bounds = array<i64: 8, 1>}, {transform_indices = @transform_5, window_bounds = array<i64: 16, 128>}, {transform_indices = @transform_6, window_bounds = array<i64: 16, 128>}, {transform_indices = @transform_7, window_bounds = array<i64: 8, 128>}]} {
    %c0 = arith.constant 0 : index
    %c0_0 = arith.constant 0 : index
    %0 = vector.load %arg1[%c0, %c0_0] : memref<16x128xf32, #tpu.memory_space<vmem>>, vector<16x128xf32>
    %c0_1 = arith.constant 0 : index
    %c0_2 = arith.constant 0 : index
    %1 = vector.load %arg2[%c0_1, %c0_2] : memref<16x128xf32, #tpu.memory_space<vmem>>, vector<16x128xf32>
    %2 = tpu.iota {dimensions = array<i32: 0>} : vector<16x128xi32>
    %3 = tpu.iota {dimensions = array<i32: 1>} : vector<16x128xi32>
    %c1_i32 = arith.constant 1 : i32
    %4 = vector.broadcast %c1_i32 : i32 to vector<16x128xi32>
    %5 = arith.andi %2, %4 : vector<16x128xi32>
    %c0_i32 = arith.constant 0 : i32
    %6 = vector.broadcast %c0_i32 : i32 to vector<16x128xi32>
    %7 = arith.cmpi eq, %5, %6 : vector<16x128xi32>
    %cst = arith.constant 6.250000e-02 : f32
    %cst_3 = arith.constant 6.250000e-02 : f32
    %8 = vector.broadcast %cst : f32 to vector<16x128xf32>
    %9 = vector.broadcast %cst_3 : f32 to vector<16x128xf32>
    %10 = arith.select %7, %8, %9 : vector<16x128xi1>, vector<16x128xf32>
    %c0_4 = arith.constant 0 : index
    %c0_5 = arith.constant 0 : index
    %11 = vector.load %arg3[%c0_4, %c0_5] : memref<16x1xi32, #tpu.memory_space<vmem>>, vector<16x1xi32>
    %12 = vector.broadcast %11 : vector<16x1xi32> to vector<16x128xi32>
    %13 = arith.cmpi slt, %3, %12 : vector<16x128xi32>
    %14 = arith.addf %0, %1 : vector<16x128xf32>
    %cst_6 = arith.constant 5.000000e-01 : f32
    %15 = vector.broadcast %cst_6 : f32 to vector<16x128xf32>
    %16 = arith.mulf %15, %10 : vector<16x128xf32>
    %17 = arith.mulf %14, %16 : vector<16x128xf32>
    %cst_7 = arith.constant 0.000000e+00 : f32
    %18 = vector.broadcast %cst_7 : f32 to vector<16x128xf32>
    %19 = arith.select %13, %17, %18 : vector<16x128xi1>, vector<16x128xf32>
    %c0_8 = arith.constant 0 : index
    %c0_9 = arith.constant 0 : index
    %20 = vector.load %arg6[%c0_8, %c0_9] : memref<16x128xf32, #tpu.memory_space<vmem>>, vector<16x128xf32>
    tpu.vector_store %arg6[%c0_8, %c0_9], %19 {strides = array<i32>} : memref<16x128xf32, #tpu.memory_space<vmem>>, vector<16x128xf32>,
    %21 = arith.subf %1, %0 : vector<16x128xf32>
    %22 = arith.mulf %21, %10 : vector<16x128xf32>
    %cst_10 = arith.constant 0.000000e+00 : f32
    %23 = vector.broadcast %cst_10 : f32 to vector<16x128xf32>
    %24 = arith.select %13, %22, %23 : vector<16x128xi1>, vector<16x128xf32>
    %c0_11 = arith.constant 0 : index
    %c0_12 = arith.constant 0 : index
    %25 = vector.load %arg7[%c0_11, %c0_12] : memref<16x128xf32, #tpu.memory_space<vmem>>, vector<16x128xf32>
    tpu.vector_store %arg7[%c0_11, %c0_12], %24 {strides = array<i32>} : memref<16x128xf32, #tpu.memory_space<vmem>>, vector<16x128xf32>,
    %26 = tpu.iota {dimensions = array<i32: 1>} : vector<8x128xi32>
    %c0_13 = arith.constant 0 : index
    %c0_14 = arith.constant 0 : index
    %27 = vector.load %arg5[%c0_13, %c0_14] : memref<8x1xi32, #tpu.memory_space<vmem>>, vector<8x1xi32>
    %28 = vector.broadcast %27 : vector<8x1xi32> to vector<8x128xi32>
    %29 = arith.cmpi slt, %26, %28 : vector<8x128xi32>
    %c0_15 = arith.constant 0 : index
    %c0_16 = arith.constant 0 : index
    %30 = vector.load %arg4[%c0_15, %c0_16] : memref<8x128xi32, #tpu.memory_space<vmem>>, vector<8x128xi32>
    %c0_i32_17 = arith.constant 0 : i32
    %31 = vector.broadcast %c0_i32_17 : i32 to vector<8x128xi32>
    %32 = arith.select %29, %30, %31 : vector<8x128xi1>, vector<8x128xi32>
    %c0_18 = arith.constant 0 : index
    %c0_19 = arith.constant 0 : index
    %33 = vector.load %arg8[%c0_18, %c0_19] : memref<8x128xi32, #tpu.memory_space<vmem>>, vector<8x128xi32>
    tpu.vector_store %arg8[%c0_18, %c0_19], %32 {strides = array<i32>} : memref<8x128xi32, #tpu.memory_space<vmem>>, vector<8x128xi32>,
    return
  }
  func.func @transform_0(%arg0: i32) -> (i32, i32) {
    %c0_i32 = arith.constant 0 : i32
    %c0_i32_0 = arith.constant 0 : i32
    return %arg0, %c0_i32 : i32, i32
  }
  func.func @transform_1(%arg0: i32) -> (i32, i32) {
    %c0_i32 = arith.constant 0 : i32
    %c0_i32_0 = arith.constant 0 : i32
    return %arg0, %c0_i32 : i32, i32
  }
  func.func @transform_2(%arg0: i32) -> (i32, i32) {
    %c0_i32 = arith.constant 0 : i32
    %c0_i32_0 = arith.constant 0 : i32
    return %arg0, %c0_i32 : i32, i32
  }
  func.func @transform_3(%arg0: i32) -> (i32, i32) {
    %c0_i32 = arith.constant 0 : i32
    %c0_i32_0 = arith.constant 0 : i32
    return %arg0, %c0_i32 : i32, i32
  }
  func.func @transform_4(%arg0: i32) -> (i32, i32) {
    %c0_i32 = arith.constant 0 : i32
    %c0_i32_0 = arith.constant 0 : i32
    return %arg0, %c0_i32 : i32, i32
  }
  func.func @transform_5(%arg0: i32) -> (i32, i32) {
    %c0_i32 = arith.constant 0 : i32
    %c0_i32_0 = arith.constant 0 : i32
    return %arg0, %c0_i32 : i32, i32
  }
  func.func @transform_6(%arg0: i32) -> (i32, i32) {
    %c0_i32 = arith.constant 0 : i32
    %c0_i32_0 = arith.constant 0 : i32
    return %arg0, %c0_i32 : i32, i32
  }
  func.func @transform_7(%arg0: i32) -> (i32, i32) {
    %c0_i32 = arith.constant 0 : i32
    %c0_i32_0 = arith.constant 0 : i32
    return %arg0, %c0_i32 : i32, i32
  }
}

</mosaic_0001>

<bundles_post_ra>
// kernel: detr_encode_batch.1
= control target key start
LH: loop header
LB: loop body
LE: loop exit
PB: predicated region body
PF: predicated region fallthrough
CT: control target
= control target key end

     0   :  { %v78_v0 = vmov 0   ;;  %v27_v6 = vlaneseq  ;;  %s158_s2 = inlined_call_operand.vmem [shape: s32[16,1], index: 2, kind: input, shape index: {}]   ;;  %s159_s4 = inlined_call_operand.vmem [shape: s32[8,1], index: 4, kind: input, shape index: {}]   ;;  %s160_s0 = inlined_call_operand.vmem [shape: f32[16,128], index: 0, kind: input, shape index: {}]   ;;  %s161_s1 = inlined_call_operand.vmem [shape: f32[16,128], index: 1, kind: input, shape index: {}]   ;;  %s162_s3 = inlined_call_operand.vmem [shape: s32[8,128], index: 3, kind: input, shape index: {}]   ;;  %s163_s5 = inlined_call_operand.vmem [shape: f32[16,128], index: 5, kind: output, shape index: {0}]   ;;  %s164_s6 = inlined_call_operand.vmem [shape: f32[16,128], index: 6, kind: output, shape index: {1}]   ;;  %s165_s7 = inlined_call_operand.vmem [shape: s32[8,128], index: 7, kind: output, shape index: {2}]  }
   0x1   :  { %76 = vset.pattern.permute.xlu0 %v78_v0  ;;  %v29_v1 = vld [vmem:[%s158_s2] sm:$0xff]  ;;  %77 = vset.pattern.permute.xlu1 %v78_v0  ;;  %v30_v3 = vld [vmem:[%s158_s2 + $0x8] sm:$0xff] }
   0x2   :  { %v55_v2 = vld [vmem:[%s159_s4] sm:$0xff]  ;;  %32 = vperm.xlu0 %76, %v29_v1   ;;  %v28_v9 = vand.u32 127, %v27_v6  ;;  %v24_v12 = vld [vmem:[%s160_s0 + $0x8] sm:$0xff] }
   0x3   :  { %57 = vperm.xlu1 %77, %v55_v2   ;;  %v23_v4 = vld [vmem:[%s160_s0] sm:$0xff]  ;;  %v26_v13 = vld [vmem:[%s161_s1 + $0x8] sm:$0xff] }
   0x4   :  { %v25_v5 = vld [vmem:[%s161_s1] sm:$0xff]  ;;  %v40_v17 = vadd.f32 %v26_v13, %v24_v12  ;;  %v48_v21 = vsub.f32 %v26_v13, %v24_v12 }
   0x5   :  { %v39_v7 = vadd.f32 %v25_v5, %v23_v4  ;;  %v47_v8 = vsub.f32 %v25_v5, %v23_v4  ;;  %v60_v14 = vld [vmem:[%s162_s3] sm:$0xff] }
   0x6   :  { %v42_v22 = vmul.f32 0.03125, %v40_v17  ;;  %v50_v23 = vmul.f32 0.0625, %v48_v21 }
   0x7   :  { %v41_v10 = vmul.f32 0.03125, %v39_v7  ;;  %v49_v11 = vmul.f32 0.0625, %v47_v8 }
   0xa   :  { %35 = vperm.xlu0 %76, %v30_v3  }
  0x74   :  { %v33_v15 = vpop.permute.xlu0 %32 }
  0x75   :  { %v58_v16 = vpop.permute.xlu1 %57  ;;  %vm37_vm0 = vcmp.lt.s32.totalorder %v28_v9, %v33_v15 }
  0x76   :  { %vm59_vm1 = vcmp.lt.s32.totalorder %v28_v9, %v58_v16  ;;  %v43_v18 = vsel %vm37_vm0, %v41_v10, 0.0  ;;  %v51_v19 = vsel %vm37_vm0, %v49_v11, 0.0 }
  0x77   :  { %v61_v20 = vsel %vm59_vm1, %v60_v14, 0  ;;  %45 = vst [vmem:[%s163_s5] sm:$0xff] %v43_v18 }
  0x78   :  { %53 = vst [vmem:[%s164_s6] sm:$0xff] %v51_v19 }
  0x79   :  { %62 = vst [vmem:[%s165_s7] sm:$0xff] %v61_v20 }
  0x7c   :  { %v36_v24 = vpop.permute.xlu0 %35 }
  0x7d   :  { %vm38_vm2 = vcmp.lt.s32.totalorder %v28_v9, %v36_v24 }
  0x7e   :  { %v44_v25 = vsel %vm38_vm2, %v42_v22, 0.0  ;;  %v52_v26 = vsel %vm38_vm2, %v50_v23, 0.0 }
  0x7f   :  { %46 = vst [vmem:[%s163_s5 + $0x8] sm:$0xff] %v44_v25 }
  0x80   :  { %54 = vst [vmem:[%s164_s6 + $0x8] sm:$0xff] %v52_v26 }

</bundles_post_ra>
